<compile_context>
chip_gen: v5e
topology: v5e:2x2
jax: 0.10.0
libtpu: 0.0.40
codegen_flags: <defaults>
</compile_context>

<pallas_src>
import math
from functools import partial

import jax
import jax.numpy as jnp
from jax.experimental import pallas as pl
from jax.experimental.pallas import tpu as pltpu


def _pick_row_tile(L, cap=512):
    """Sublane-axis tile: a power-of-two multiple of 8 that divides L, else full L."""
    t = cap
    while t >= 8:
        if L % t == 0:
            return t
        t //= 2
    return L


def _pick_kv_tile(L, cap=512):
    """KV tile: the mask block's last dim must be a multiple of 128 or full Lk."""
    t = cap
    while t >= 128:
        if L % t == 0:
            return t
        t //= 2
    return L


# ---------------------------------------------------------------------------
# Phase 1: full-width projection  x[B,L,D] @ W_t[D,D] + b -> [B,L,D] (bf16)
# ---------------------------------------------------------------------------
def _proj_kernel(x_ref, w_ref, b_ref, o_ref):
    x = x_ref[0].astype(jnp.bfloat16)                              # (Tr, D)
    y = jnp.dot(x, w_ref[...], preferred_element_type=jnp.float32) # (Tr, D) f32
    o_ref[0] = (y + b_ref[...]).astype(o_ref.dtype)


def _project(x, w_t, b):
    """x: [B,L,D] f32; w_t: [D,D] bf16 (= W.T, scale pre-folded); b: [1,D] f32."""
    B, L, D = x.shape
    Tr = _pick_row_tile(L)
    n_r = L // Tr
    return pl.pallas_call(
        _proj_kernel,
        out_shape=jax.ShapeDtypeStruct((B, L, D), jnp.bfloat16),
        grid_spec=pltpu.PrefetchScalarGridSpec(
            num_scalar_prefetch=0,
            grid=(B, n_r),
            in_specs=[
                pl.BlockSpec((1, Tr, D), lambda bi, r: (bi, r, 0)),
                pl.BlockSpec((D, D), lambda bi, r: (0, 0)),    # resident weight
                pl.BlockSpec((1, D), lambda bi, r: (0, 0)),    # resident bias
            ],
            out_specs=pl.BlockSpec((1, Tr, D), lambda bi, r: (bi, r, 0)),
        ),
        compiler_params=pltpu.CompilerParams(
            dimension_semantics=("parallel", "parallel"),
            vmem_limit_bytes=32 * 1024 * 1024),
    )(x, w_t, b)


# ---------------------------------------------------------------------------
# Phase 2: flash attention (online softmax, heads looped in-kernel)
#          + fused full-width output projection
# ---------------------------------------------------------------------------
def _flash_mha_kernel(q_ref, k_ref, v_ref, mask_ref, wo_ref, bo_ref, out_ref,
                      m_sc, l_sc, acc_sc, *, h, d_k):
    kv = pl.program_id(2)
    n_kv = pl.num_programs(2)
    is_last = kv == n_kv - 1

    @pl.when(kv == 0)
    def _():
        m_sc[...] = jnp.full_like(m_sc, -jnp.inf)
        l_sc[...] = jnp.zeros_like(l_sc)
        acc_sc[...] = jnp.zeros_like(acc_sc)

    # Mask is shared by all heads: load / compare once per kv step.
    neg_mask = mask_ref[0] == 0                                    # (Tq, Tk) bool

    for j in range(h):
        sl = slice(j * d_k, (j + 1) * d_k)     # per-head feature columns
        jm = slice(j, j + 1)                   # per-head stat column

        q_j = q_ref[0, :, sl]                  # (Tq, d_k) bf16, pre-scaled
        k_j = k_ref[0, :, sl]                  # (Tk, d_k) bf16
        v_j = v_ref[0, :, sl]                  # (Tk, d_k) bf16

        # Scores in f32 (accumulation), bf16 MXU operands.
        s = jnp.einsum("qd,kd->qk", q_j, k_j,
                       preferred_element_type=jnp.float32)         # (Tq, Tk)
        # masked_fill(mask == 0, -1e9); fill + softmax math stay f32.
        s = jnp.where(neg_mask, jnp.float32(-1e9), s)

        m_prev = m_sc[:, jm]                                       # (Tq, 1)
        m_new = jnp.maximum(m_prev, jnp.max(s, axis=-1, keepdims=True))
        alpha = jnp.exp(m_prev - m_new)
        p = jnp.exp(s - m_new)                                     # f32
        l_new = alpha * l_sc[:, jm] + jnp.sum(p, axis=-1, keepdims=True)
        acc_new = alpha * acc_sc[:, sl] + jnp.dot(
            p.astype(v_j.dtype), v_j, preferred_element_type=jnp.float32)

        m_sc[:, jm] = m_new
        l_sc[:, jm] = l_new
        acc_sc[:, sl] = acc_new

        @pl.when(is_last)
        def _():
            # Finalize this head: normalize its context slice in place.
            acc_sc[:, sl] = acc_new * pl.reciprocal(l_new, approx=False)

    @pl.when(is_last)
    def _():
        # Single full-width output projection: (Tq, D) @ (D, D), full MXU fill.
        ctx = acc_sc[...].astype(jnp.bfloat16)
        out = jnp.dot(ctx, wo_ref[...], preferred_element_type=jnp.float32)
        out_ref[0] = (out + bo_ref[...]).astype(out_ref.dtype)


def multi_headed_attention(query, key, value, mask, params, *, h):
    """query: [B,Lq,D], key/value: [B,Lk,D] f32; mask: [B,Lq,Lk] (1 keep / 0 mask)."""
    B, Lq, D = query.shape
    Lk = key.shape[1]
    assert D % h == 0
    d_k = D // h
    bf16 = jnp.bfloat16
    scale = 1.0 / math.sqrt(d_k)

    # PyTorch Linear weights are (out, in): y = x @ W.T + b. Pre-transpose once
    # (tiny (D,D) host-side op); fold the 1/sqrt(d_k) scale into Q's weight+bias.
    wq = (params["wq"].T * scale).astype(bf16)
    bq = (params["bq"] * scale).astype(jnp.float32).reshape(1, D)
    wk = params["wk"].T.astype(bf16)
    bk = params["bk"].astype(jnp.float32).reshape(1, D)
    wv = params["wv"].T.astype(bf16)
    bv = params["bv"].astype(jnp.float32).reshape(1, D)
    wo = params["wo"].T.astype(bf16)
    bo = params["bo"].astype(jnp.float32).reshape(1, D)

    # Phase 1: lane-dense [B, L, D] bf16 projections (resident weights).
    q = _project(query, wq, bq)
    k = _project(key, wk, bk)
    v = _project(value, wv, bv)

    mask_i8 = mask.astype(jnp.int8)        # 4x less mask DMA than int32

    Tq = _pick_row_tile(Lq)
    Tk = _pick_kv_tile(Lk)
    n_q, n_kv = Lq // Tq, Lk // Tk

    kernel = partial(_flash_mha_kernel, h=h, d_k=d_k)
    return pl.pallas_call(
        kernel,
        out_shape=jax.ShapeDtypeStruct((B, Lq, D), query.dtype),
        grid_spec=pltpu.PrefetchScalarGridSpec(
            num_scalar_prefetch=0,
            grid=(B, n_q, n_kv),                   # kv reduction axis last
            in_specs=[
                pl.BlockSpec((1, Tq, D), lambda b, qi, kv: (b, qi, 0)),
                pl.BlockSpec((1, Tk, D), lambda b, qi, kv: (b, kv, 0)),
                pl.BlockSpec((1, Tk, D), lambda b, qi, kv: (b, kv, 0)),
                pl.BlockSpec((1, Tq, Tk), lambda b, qi, kv: (b, qi, kv)),
                pl.BlockSpec((D, D), lambda b, qi, kv: (0, 0)),   # resident W_o
                pl.BlockSpec((1, D), lambda b, qi, kv: (0, 0)),   # resident b_o
            ],
            out_specs=pl.BlockSpec((1, Tq, D), lambda b, qi, kv: (b, qi, 0)),
            scratch_shapes=[
                pltpu.VMEM((Tq, h), jnp.float32),   # running max  m (per head col)
                pltpu.VMEM((Tq, h), jnp.float32),   # running sum  l (per head col)
                pltpu.VMEM((Tq, D), jnp.float32),   # per-head context accumulator
            ],
        ),
        compiler_params=pltpu.CompilerParams(
            dimension_semantics=("parallel", "parallel", "arbitrary"),
            vmem_limit_bytes=32 * 1024 * 1024),
    )(q, k, v, mask_i8, wo, bo)


def _init_params(key, d_model):
    """Deterministic PyTorch-Linear-style init: U(-1/sqrt(fan_in), 1/sqrt(fan_in))."""
    bound = 1.0 / math.sqrt(d_model)
    keys = jax.random.split(key, 8)
    u = lambda k, shape: jax.random.uniform(k, shape, jnp.float32, -bound, bound)
    return {
        "wq": u(keys[0], (d_model, d_model)), "bq": u(keys[1], (d_model,)),
        "wk": u(keys[2], (d_model, d_model)), "bk": u(keys[3], (d_model,)),
        "wv": u(keys[4], (d_model, d_model)), "bv": u(keys[5], (d_model,)),
        "wo": u(keys[6], (d_model, d_model)), "bo": u(keys[7], (d_model,)),
    }


if __name__ == "__main__":
    B, L, d_model, h = 2, 8, 32, 4

    root = jax.random.PRNGKey(0)
    k_param, k_q, k_k, k_v = jax.random.split(root, 4)

    params = _init_params(k_param, d_model)

    query = jax.random.normal(k_q, (B, L, d_model), jnp.float32)
    key = jax.random.normal(k_k, (B, L, d_model), jnp.float32)
    value = jax.random.normal(k_v, (B, L, d_model), jnp.float32)

    # Causal-style mask (1 = keep, 0 = masked), broadcast over batch.
    mask = jnp.tril(jnp.ones((L, L), jnp.int32))[None, :, :].repeat(B, axis=0)

    out = multi_headed_attention(query, key, value, mask, params, h=h)
    jax.block_until_ready(out)

    # Pure-JAX f32 reference of the same math (eval-mode, no dropout).
    def ref(q, k, v, m, p):
        def lin(x, w, b):
            return x @ w.T + b
        d_k = d_model // h
        qh = lin(q, p["wq"], p["bq"]).reshape(B, L, h, d_k).transpose(0, 2, 1, 3)
        kh = lin(k, p["wk"], p["bk"]).reshape(B, L, h, d_k).transpose(0, 2, 1, 3)
        vh = lin(v, p["wv"], p["bv"]).reshape(B, L, h, d_k).transpose(0, 2, 1, 3)
        s = jnp.einsum("bhqd,bhkd->bhqk", qh, kh) / math.sqrt(d_k)
        s = jnp.where(m[:, None, :, :] == 0, -1e9, s)
        a = jax.nn.softmax(s, axis=-1)
        ctx = jnp.einsum("bhqk,bhkd->bhqd", a, vh).transpose(0, 2, 1, 3).reshape(B, L, d_model)
        return lin(ctx, p["wo"], p["bo"])

    expected = ref(query, key, value, mask, params)
    # bf16 MXU operands => relaxed tolerance vs f32 reference.
    assert jnp.allclose(out, expected, atol=5e-2, rtol=5e-2), "mismatch vs JAX reference"

    print("KERNEL_OK")
</pallas_src>

<mosaic_0001>
module attributes {stable_mosaic.version = 11 : i64} {
  func.func @_proj_kernel(%arg0: i32, %arg1: i32, %arg2: memref<1x8x32xf32, #tpu.memory_space<vmem>>, %arg3: memref<32x32xbf16, #tpu.memory_space<vmem>>, %arg4: memref<1x32xf32, #tpu.memory_space<vmem>>, %arg5: memref<1x8x32xbf16, #tpu.memory_space<vmem>>) attributes {dimension_semantics = [#tpu.dimension_semantics<parallel>, #tpu.dimension_semantics<parallel>], iteration_bounds = array<i64: 2, 1>, scalar_prefetch = 0 : i64, scratch_operands = 0 : i64, tpu.core_type = #tpu.core_type<tc>, window_params = [{transform_indices = @transform_0, window_bounds = array<i64: 1, 8, 32>}, {pipeline_mode = #tpu.pipeline_mode<synchronous>, transform_indices = @transform_1, window_bounds = array<i64: 32, 32>}, {pipeline_mode = #tpu.pipeline_mode<synchronous>, transform_indices = @transform_2, window_bounds = array<i64: 1, 32>}, {transform_indices = @transform_3, window_bounds = array<i64: 1, 8, 32>}]} {
    %c0 = arith.constant 0 : index
    %c0_0 = arith.constant 0 : index
    %c0_1 = arith.constant 0 : index
    %0 = vector.load %arg2[%c0, %c0_0, %c0_1] : memref<1x8x32xf32, #tpu.memory_space<vmem>>, vector<1x8x32xf32>
    %1 = vector.shape_cast %0 : vector<1x8x32xf32> to vector<8x32xf32>
    %2 = arith.truncf %1 : vector<8x32xf32> to vector<8x32xbf16>
    %c0_2 = arith.constant 0 : index
    %c0_3 = arith.constant 0 : index
    %3 = vector.load %arg3[%c0_2, %c0_3] : memref<32x32xbf16, #tpu.memory_space<vmem>>, vector<32x32xbf16>
    %cst = arith.constant dense<0.000000e+00> : vector<8x32xf32>
    %4 = tpu.matmul %2, %3, %cst {dimension_numbers = #tpu.dot_dimension_numbers<[1], [0], [0], [1], [0, 0, 1, 1], [], []>} : vector<8x32xbf16>, vector<32x32xbf16>, vector<8x32xf32> -> vector<8x32xf32>
    %c0_4 = arith.constant 0 : index
    %c0_5 = arith.constant 0 : index
    %5 = vector.load %arg4[%c0_4, %c0_5] : memref<1x32xf32, #tpu.memory_space<vmem>>, vector<1x32xf32>
    %6 = vector.broadcast %5 : vector<1x32xf32> to vector<8x32xf32>
    %7 = arith.addf %4, %6 : vector<8x32xf32>
    %8 = arith.truncf %7 : vector<8x32xf32> to vector<8x32xbf16>
    %c0_6 = arith.constant 0 : index
    %c0_7 = arith.constant 0 : index
    %c0_8 = arith.constant 0 : index
    %9 = vector.load %arg5[%c0_6, %c0_7, %c0_8] : memref<1x8x32xbf16, #tpu.memory_space<vmem>>, vector<1x8x32xbf16>
    %10 = vector.shape_cast %9 : vector<1x8x32xbf16> to vector<8x32xbf16>
    %11 = vector.shape_cast %8 : vector<8x32xbf16> to vector<1x8x32xbf16>
    tpu.vector_store %arg5[%c0_6, %c0_7, %c0_8], %11 {strides = array<i32>} : memref<1x8x32xbf16, #tpu.memory_space<vmem>>, vector<1x8x32xbf16>,
    return
  }
  func.func @transform_0(%arg0: i32, %arg1: i32) -> (i32, i32, i32) {
    %c0_i32 = arith.constant 0 : i32
    %c0_i32_0 = arith.constant 0 : i32
    return %arg0, %arg1, %c0_i32 : i32, i32, i32
  }
  func.func @transform_1(%arg0: i32, %arg1: i32) -> (i32, i32) {
    %c0_i32 = arith.constant 0 : i32
    %c0_i32_0 = arith.constant 0 : i32
    %c0_i32_1 = arith.constant 0 : i32
    return %c0_i32, %c0_i32_0 : i32, i32
  }
  func.func @transform_2(%arg0: i32, %arg1: i32) -> (i32, i32) {
    %c0_i32 = arith.constant 0 : i32
    %c0_i32_0 = arith.constant 0 : i32
    %c0_i32_1 = arith.constant 0 : i32
    return %c0_i32, %c0_i32_0 : i32, i32
  }
  func.func @transform_3(%arg0: i32, %arg1: i32) -> (i32, i32, i32) {
    %c0_i32 = arith.constant 0 : i32
    %c0_i32_0 = arith.constant 0 : i32
    return %arg0, %arg1, %c0_i32 : i32, i32, i32
  }
}

</mosaic_0001>

<bundles_post_ra>
// kernel: tpu_custom_call.1
= control target key start
LH: loop header
LB: loop body
LE: loop exit
PB: predicated region body
PF: predicated region fallthrough
CT: control target
= control target key end

     0   :  { %8 = vsyncpa [#allocation3], 0  ;;  %s792_s0 = inlined_call_operand.hbm [shape: f32[2,8,32], index: 0, kind: input, shape index: {}]   ;;  %s793_s1 = inlined_call_operand.hbm [shape: bf16[32,32], index: 1, kind: input, shape index: {}]   ;;  %s794_s2 = inlined_call_operand.vmem [shape: f32[1,32], index: 2, kind: input, shape index: {}]   ;;  %s795_s3 = inlined_call_operand.hbm [shape: bf16[2,8,32], index: 3, kind: output, shape index: {}]  }
   0x1   :  { %10 = vsyncpa [#allocation3 + $0x1], 0 }
   0x2   :  { %11 = vsyncpa [#allocation6], 0 }
   0x3   :  { %12 = vsyncpa [#allocation4], 0 }
   0x4   :  { %14 = vsyncpa [#allocation4 + $0x1], 0  ;;  %s645_s12 = smov 0   ;;  %s647_s13 = smov 0  }
   0x5   :  { %s649_s14 = smov 0   ;;  %s651_s15 = smov 0  }
   0x6   :  { %s653_s16 = smov 0   ;;  %s655_s17 = smov 0  }
   0x7 LB: > { %s372_s18 = sadd.s32 4294967295, %s620_s17   ;;  %p374_p0 = scmp.ge.s32.totalorder %s620_s17, 1  ;;  %s620_s17 = sphi %s655_s17, %s20_s17   ;;  %s616_s16 = sphi %s653_s16, %s806_s16   ;;  %s612_s15 = sphi %s651_s15, %s805_s15   ;;  %s608_s14 = sphi %s649_s14, %s804_s14   ;;  %s604_s13 = sphi %s647_s13, %s803_s13   ;;  %s600_s12 = sphi %s645_s12, %s802_s12  }
   0x8   : > { %p677_p1 = scmp.eq.s32.totalorder %s372_s18, 0  ;;  %p135_p2 = scmp.lt.s32.totalorder %s620_s17, 3 }
   0x9   : > { %s146_s22 = sshll.u32 %s793_s1, 4  ;;  %s622_s24 = smov [#allocation5]   ;;  %s147_s22 = int_to_ptr.hbm [resolvable:$true] %s146_s22 }
   0xa   : > { %p685_p3 = pnand %p374_p0, %p135_p2  ;;  %s148_s25 = sshll.u32 %s622_s24, 4  ;;  %s149_s25 = int_to_ptr.vmem [resolvable:$true] %s148_s25 }
   0xb   : > { %p376_p6 = scmp.ge.s32.totalorder %s620_s17, 2  ;;  %s623_s26 = smov 64  }
   0xc   : > { %p406_p4 = pneg %p685_p3  ;;  %s624_s27 = smov 4  }
   0xd   : > { %s373_s28 = sadd.s32 4294967294, %s620_s17   ;;  %s32_s29 = sadd.s32 1, %s616_s16 }
   0xe   : > { %p407_p5 = pnand %p406_p4, %p677_p1  ;;  %s41_s30 = sadd.s32 1, %s608_s14 }
   0xf   : > { %p34_p7 = scmp.ge.s32.totalorder %s32_s29, 2  ;;  %p48_p8 = scmp.ne.s32.totalorder %s608_s14, %s604_s13 }
  0x10   : > { %409 = dma.hbm_to_vmem [thread:$0]  (!%p407_p5), %s147_s22, 256, %s149_s25, [#allocation6], %s623_s26, %s623_s26, %s624_s27  }
  0x11   : > { %p49_p9 = scmp.eq.s32.totalorder %s620_s17, 0  ;;  %p54_p10 = scmp.ne.s32.totalorder %s604_s13, %s600_s12 }
  0x12   : > { %s808_s29 = smov (%p34_p7, %s32_s29), 0  ;;  %p122_p13 = scmp.eq.s32.totalorder %s372_s18, 1 }
  0x13   : > { %p704_p11 = por %p49_p9, %p48_p8  ;;  %p710_p12 = por %p677_p1, %p54_p10 }
  0x14   : > { %s36_s6 = ssub.s32 %s616_s16, %s808_s29  ;;  %p128_p2 = scmp.eq.s32.totalorder %s373_s28, 1 }
  0x15   : > { %p39_p0 = scmp.eq.s32.totalorder %s36_s6, 0  ;;  %p716_p4 = por %p122_p13, %p48_p8 }
  0x16   : > { %p419_p5 = scmp.lt.s32.totalorder %s620_s17, 2  ;;  %p724_p7 = por %p128_p2, %p54_p10 }
  0x17   : > { %s722_s8 = scalar_select %p39_p0, %s608_s14, %s41_s30  }
  0x18   : > { %s165_s10 = sand.u32 1, %s608_s14   ;;  %s378_s20 = sshll.u32 %s616_s16, 3 }
  0x19   : > { %s377_s11 = sshll.u32 %s165_s10, 3  ;;  %s174_s18 = scalar_lea.hbm %s792_s0, %s378_s20 }
  0x1a   : > { %s169_s24 = scalar_lea.vmem [#allocation2], %s377_s11  ;;  %s176_s26 = sshll.u32 %s174_s18, 4  ;;  %s177_s26 = int_to_ptr.hbm [resolvable:$true] %s176_s26 }
  0x1b   : > { %s178_s25 = sshll.u32 %s169_s24, 4  ;;  %p411_p8 = pnand %p419_p5, %p704_p11  ;;  %s179_s25 = int_to_ptr.vmem [resolvable:$true] %s178_s25 }
  0x1c   : > { %s166_s27 = scalar_lea.sflag [#allocation3], %s165_s10  ;;  %187 = sbr.rel (%p685_p3) target bundleno = 178 (0xb2), region = 32 }
  0x1d   : > { %413 = dma.hbm_to_vmem [thread:$0]  (!%p411_p8), %s177_s26, 128, %s179_s25, %s166_s27  }
  0x1e   : > { %s738_s28 = sand.u32 (!%p685_p3), 1, %s604_s13  }
  0x1f   : > { %s380_s30 = sshll.u32 (!%p685_p3), %s738_s28, 3  ;;  %s190_s6 = scalar_lea.sflag (!%p685_p3), [#allocation3], %s738_s28 }
  0x20   : > { %s193_s11 = scalar_lea.vmem (!%p685_p3), [#allocation2], %s380_s30 }
  0x21   : > { %587 = dma.done.wait (%p710_p12), %s190_s6, 128  }
  0x22   : > { %589 = vsyncadd (%p710_p12), %s190_s6, 4294967168 }
  0x23   : > { %591 = dma.done.wait (%p677_p1), [#allocation6], 256  }
  0x24   : > { %593 = vsyncadd (%p677_p1), [#allocation6], 4294967040  ;;  %v397_v0 = vld [vmem:[#allocation5 + $0x8] sm:$0xff]  ;;  %v396_v1 = vld [vmem:[#allocation5] sm:$0xff]  ;;  %vm245_vm0 = vcmask 261120   ;;  %s382_s23 = sshll.u32 %s738_s28, 2 }
  0x25   : > { %255 = vmatpush.bf16.msra.mxu0 %v397_v0  ;;  %v223_v2 = vld [vmem:[%s193_s11] sm:$0xff]  ;;  %s393_s4 = sshll.u32 %s612_s15, 2  ;;  %s221_s22 = scalar_lea.vmem [#allocation7], %s382_s23  ;;  %vm263_vm1 = vcmask 257024  }
  0x26   : > { %v224_v3 = vpack.c.bf16 %v223_v2, %v223_v2  ;;  %v473_v4 = vld [vmem:[%s794_s2] ss:$0 sm:$0xff]  ;;  %s277_s21 = scalar_lea.hbm %s795_s3, %s393_s4  ;;  %s279_s18 = sshll.u32 %s221_s22, 4  ;;  %s280_s18 = int_to_ptr.vmem [resolvable:$true] %s279_s18 }
  0x27   : > { %s281_s24 = sshll.u32 %s277_s21, 4  ;;  %s266_s15 = scalar_lea.sflag [#allocation4], %s738_s28  ;;  %s282_s24 = int_to_ptr.hbm [resolvable:$true] %s281_s24 }
  0x28   : > { %s548_s25 = sshra.s32 %s282_s24, 4  ;;  %s554_s6 = scalar_lea.hbm %s795_s3, 8  ;;  %s549_s25 = int_to_ptr.hbm [resolvable:$true] %s548_s25 }
  0x29   : > { %256 = vmatpush.bf16.msra.mxu0 %v396_v1  ;;  %s550_s26 = scalar_lea.hbm %s549_s25, 4  ;;  %p555_p10 = scmp.lt.s32.totalorder %s549_s25, %s795_s3 }
  0x2a   : > { %p551_p1 = scmp.ne.s32.totalorder %s549_s25, %s550_s26  ;;  %p556_p11 = scmp.lt.s32.totalorder %s554_s6, %s550_s26 }
  0x2c   : > { %391 = vmatmul.msk.bf16.vlgmr.msra.gmra.mxu0 %vm245_vm0, %v224_v3  ;;  %p552_p3 = pnand %p551_p1, %p716_p4  ;;  %p557_p12 = por %p556_p11, %p555_p10 }
  0x2e   : > { %p553_p9 = pneg %p552_p3 }
  0x30   : > { %p558_p13 = pnand %p557_p12, %p553_p9 }
  0xa9   : > { %v258_v5 = vpop.f32.mrf.mxu0 }
  0xaa   : > { %v259_v6 = vadd.f32 %v473_v4, %v258_v5 }
  0xac   : > { %v262_v7 = vpack.c.bf16 %v259_v6, %v259_v6 }
  0xae   : > { %264 = vst.msk [vmem:[%s221_s22] sm:$0xf] %vm263_vm1, %v262_v7 }
  0xaf   : > { %561 = shalt.err (!%p558_p13)
}
  0xb0   : > { %404 = dma.vmem_to_hbm [thread:$0]  (%p716_p4), %s280_s18, 64, %s282_s24, %s266_s15  }
  0xb1   : > { %v260_v8 = vpop.f32.mrf.mxu0 }
  0xb2 PF: > { %s293_s28 = sand.u32 1, %s600_s12   ;;  %p415_p0 = pnand %p376_p6, %p724_p7 }
  0xb3   : > { %s294_s4 = scalar_lea.sflag [#allocation4], %s293_s28 }
  0xb4   : > { %p416_p2 = pneg %p415_p0 }
  0xb6   : > { %595 = dma.done.wait (%p416_p2), %s294_s4, 64  }
  0xb7   : > { %597 = vsyncadd (%p416_p2), %s294_s4, 4294967232  ;;  %s20_s17 = sadd.s32 1, %s620_s17   ;;  %s802_s12 = smov %s604_s13 }
  0xb8   : > { %p17_p5 = scmp.ge.s32.totalorder %s20_s17, 4   ;;  %s803_s13 = smov %s608_s14 }
  0xb9   : > { %s804_s14 = smov %s722_s8  ;;  %s805_s15 = smov %s616_s16 }
  0xba   : > { %s806_s16 = smov %s808_s29  ;;  %19 = sbr.rel (!%p17_p5) target bundleno = 7 (0x7), region = 81 }
  0xbf   :  { %300 = vsyncpa [#allocation3], 1 }
  0xc0   :  { %302 = vsyncpa [#allocation3 + $0x1], 1 }
  0xc1   :  { %303 = vsyncpa [#allocation6], 1 }
  0xc2   :  { %304 = vsyncpa [#allocation4], 1 }
  0xc3   :  { %306 = vsyncpa [#allocation4 + $0x1], 1 }

</bundles_post_ra>
